<compile_context>
chip_gen: v6e
topology: v6e:2x2x1
jax: 0.10.0
libtpu: 0.0.40
codegen_flags: <defaults>
</compile_context>

<pallas_src>
import functools

import jax
import jax.numpy as jnp
from jax.experimental import pallas as pl
from jax.experimental.pallas import tpu as pltpu

NEG_BIG = jnp.float32(-1e30)  # finite "minus infinity" for padded logit lanes


def policy_kernel(x_ref, sp_ref, wbig_ref, gumbel_ref, out_ref, *,
                  state_dim, hidden, a_pad):
    x = x_ref[...]  # (B, state_dim) f32

    # Small-parameter slab rows: [w1_row0..w1_row{S-1}, b1, b2, b3_pad, 0...]
    b1 = sp_ref[state_dim:state_dim + 1, :]              # (1, hidden)
    b2 = sp_ref[state_dim + 1:state_dim + 2, :]          # (1, hidden)
    b3 = sp_ref[state_dim + 2:state_dim + 3, :a_pad]     # (1, a_pad), pad=-1e30

    # fc1 + relu as VPU broadcast-FMA (K = 2 is far too small for the MXU).
    h1 = b1
    for k in range(state_dim):                            # static unroll
        h1 = h1 + x[:, k:k + 1] * sp_ref[k:k + 1, :]
    h1 = jnp.maximum(h1, 0.0)                             # (B, hidden) f32

    # fc2 + relu (MXU, bf16 weights, f32 accumulation).
    h2 = jnp.dot(h1.astype(jnp.bfloat16), wbig_ref[:, :hidden],
                 preferred_element_type=jnp.float32) + b2
    h2 = jnp.maximum(h2, 0.0)                             # (B, hidden) f32

    # fc3 -> lane-dense padded logits; padded lanes end up at ~-1e30 via b3.
    logits = jnp.dot(h2.astype(jnp.bfloat16),
                     wbig_ref[:, hidden:hidden + a_pad],
                     preferred_element_type=jnp.float32) + b3   # (B, a_pad)

    # log-softmax (Categorical(logits=...) normalization); padded lanes
    # contribute exp(-1e30 - m) == 0 to the sum.
    m = jnp.max(logits, axis=-1, keepdims=True)
    z = logits - m
    lse = jnp.log(jnp.sum(jnp.exp(z), axis=-1, keepdims=True))
    log_probs = z - lse                                   # (B, a_pad)

    # Gumbel-max categorical sampling (noise precomputed in the wrapper).
    # Padded lanes sit at ~-1e30 and can never win the max.
    perturbed = logits + gumbel_ref[...]
    B = logits.shape[0]
    ids = jax.lax.broadcasted_iota(jnp.int32, (B, a_pad), 1)
    pmax = jnp.max(perturbed, axis=-1, keepdims=True)
    is_max = perturbed >= pmax
    action = jnp.min(jnp.where(is_max, ids, a_pad),
                     axis=-1, keepdims=True)              # (B, 1) int32

    sel = ids == action
    log_prob = jnp.sum(jnp.where(sel, log_probs, 0.0),
                       axis=-1, keepdims=True)            # (B, 1) f32

    # Single lane-dense output slab: lane 0 = action (exact as float for small
    # ints), lane 1 = log_prob, remaining lanes zero.
    out = jnp.where(ids == 0, action.astype(jnp.float32),
                    jnp.where(ids == 1, log_prob, 0.0))
    out_ref[...] = out


@functools.partial(jax.jit, static_argnames=("state_dim", "hidden", "a_pad"))
def policy_forward(state, key, sp, wbig, *, state_dim, hidden, a_pad):
    """state: (B, state_dim) f32. Returns (action (B,) int32, log_prob (B,) f32)."""
    B0 = state.shape[0]
    B = max(8, ((B0 + 7) // 8) * 8)           # sublane-align the batch
    if B != B0:
        state = jnp.pad(state, ((0, B - B0), (0, 0)))

    # Gumbel noise drawn host-side (portable; caller controls the PRNG key).
    gumbel = jax.random.gumbel(key, (B, a_pad), jnp.float32)

    flops = 2 * B * (state_dim * hidden + hidden * hidden + hidden * a_pad)
    bytes_accessed = (state.size * 4 + sp.size * 4 + wbig.size * 2
                      + gumbel.size * 4 + B * a_pad * 4)
    cost = pl.CostEstimate(flops=flops, transcendentals=B * (a_pad + 1),
                           bytes_accessed=bytes_accessed)

    vmem = pl.BlockSpec(memory_space=pltpu.MemorySpace.VMEM)
    out = pl.pallas_call(
        functools.partial(policy_kernel, state_dim=state_dim,
                          hidden=hidden, a_pad=a_pad),
        out_shape=jax.ShapeDtypeStruct((B, a_pad), jnp.float32),
        in_specs=[vmem, vmem, vmem, vmem],
        out_specs=vmem,
        cost_estimate=cost,
    )(state, sp, wbig, gumbel)

    action = out[:B0, 0].astype(jnp.int32)
    log_prob = out[:B0, 1]
    return action, log_prob


def init_linear(key, fan_in, fan_out):
    """PyTorch nn.Linear default init: U(-1/sqrt(fan_in), 1/sqrt(fan_in))."""
    kw, kb = jax.random.split(key)
    bound = 1.0 / jnp.sqrt(jnp.asarray(fan_in, jnp.float32))
    w = jax.random.uniform(kw, (fan_in, fan_out), jnp.float32, -bound, bound)
    b = jax.random.uniform(kb, (1, fan_out), jnp.float32, -bound, bound)
    return w, b


def pack_params(w1, b1, w2, b2, w3, b3, *, a_pad=128):
    """Pack parameters into (sp f32 (8,hidden), wbig bf16 (hidden, hidden+a_pad))."""
    state_dim, hidden = w1.shape
    action_dim = w3.shape[1]
    assert a_pad >= action_dim and hidden >= a_pad

    n_rows = state_dim + 3
    n_rows_pad = max(8, ((n_rows + 7) // 8) * 8)
    sp = jnp.zeros((n_rows_pad, hidden), jnp.float32)
    sp = sp.at[:state_dim, :].set(w1)
    sp = sp.at[state_dim, :].set(b1[0])
    sp = sp.at[state_dim + 1, :].set(b2[0])
    b3_pad = jnp.full((a_pad,), NEG_BIG, jnp.float32).at[:action_dim].set(b3[0])
    sp = sp.at[state_dim + 2, :a_pad].set(b3_pad)

    w3_pad = jnp.zeros((hidden, a_pad), jnp.float32).at[:, :action_dim].set(w3)
    wbig = jnp.concatenate([w2, w3_pad], axis=1).astype(jnp.bfloat16)
    return sp, wbig


if __name__ == "__main__":
    # Shapes implied by the SAC setup: state_dim = 2 (Box obs), action_dim = 2
    # (Discrete(2)), hidden_dim = 256 (module default). Small batch of 8 states.
    batch = 8
    state_dim = 2
    action_dim = 2
    hidden_dim = 256
    A_PAD = 128  # lane-dense padded logits width

    key = jax.random.PRNGKey(0)
    k1, k2, k3, kx, ks = jax.random.split(key, 5)
    w1, b1 = init_linear(k1, state_dim, hidden_dim)
    w2, b2 = init_linear(k2, hidden_dim, hidden_dim)
    w3, b3 = init_linear(k3, hidden_dim, action_dim)

    sp, wbig = pack_params(w1, b1, w2, b2, w3, b3, a_pad=A_PAD)

    # Example states: [electricity_plan[t], predicted_power[t]] >= 0
    state = jax.random.uniform(kx, (batch, state_dim), jnp.float32, 0.0, 100.0)

    action, log_prob = policy_forward(state, ks, sp, wbig,
                                      state_dim=state_dim, hidden=hidden_dim,
                                      a_pad=A_PAD)
    jax.block_until_ready((action, log_prob))

    # Sanity checks against the module semantics.
    assert action.shape == (batch,) and action.dtype == jnp.int32
    assert log_prob.shape == (batch,) and log_prob.dtype == jnp.float32
    assert bool(jnp.all((action >= 0) & (action < action_dim)))
    assert bool(jnp.all(log_prob <= 0.0))

    # Cross-check log_prob against a pure-JAX reference of the same forward
    # (same weights, same sampled actions).
    h1 = jnp.maximum(state @ w1 + b1, 0.0)
    h2 = jnp.maximum(h1 @ w2.astype(jnp.bfloat16).astype(jnp.float32) + b2, 0.0)
    logits = h2 @ w3.astype(jnp.bfloat16).astype(jnp.float32) + b3
    ref_lp = jax.nn.log_softmax(logits, axis=-1)
    ref_sel = jnp.take_along_axis(ref_lp, action[:, None], axis=-1)[:, 0]
    assert bool(jnp.all(jnp.abs(ref_sel - log_prob) < 1e-2))

    print("KERNEL_OK")
</pallas_src>

<mosaic_0001>
module attributes {stable_mosaic.version = 11 : i64} {
  func.func @policy_kernel(%arg0: memref<8x2xf32, #tpu.memory_space<vmem>>, %arg1: memref<8x256xf32, #tpu.memory_space<vmem>>, %arg2: memref<256x384xbf16, #tpu.memory_space<vmem>>, %arg3: memref<8x128xf32, #tpu.memory_space<vmem>>, %arg4: memref<8x128xf32, #tpu.memory_space<vmem>>) attributes {dimension_semantics = [], scalar_prefetch = 0 : i64, scratch_operands = 0 : i64, tpu.core_type = #tpu.core_type<tc>} {
    %c0 = arith.constant 0 : index
    %c0_0 = arith.constant 0 : index
    %0 = vector.load %arg0[%c0, %c0_0] : memref<8x2xf32, #tpu.memory_space<vmem>>, vector<8x2xf32>
    %c2 = arith.constant 2 : index
    %c0_1 = arith.constant 0 : index
    %1 = vector.load %arg1[%c2, %c0_1] : memref<8x256xf32, #tpu.memory_space<vmem>>, vector<1x256xf32>
    %c3 = arith.constant 3 : index
    %c0_2 = arith.constant 0 : index
    %2 = vector.load %arg1[%c3, %c0_2] : memref<8x256xf32, #tpu.memory_space<vmem>>, vector<1x256xf32>
    %c4 = arith.constant 4 : index
    %c0_3 = arith.constant 0 : index
    %3 = vector.load %arg1[%c4, %c0_3] : memref<8x256xf32, #tpu.memory_space<vmem>>, vector<1x128xf32>
    %4 = vector.extract_strided_slice %0 {offsets = [0, 0], sizes = [8, 1], strides = [1, 1]} : vector<8x2xf32> to vector<8x1xf32>
    %c0_4 = arith.constant 0 : index
    %c0_5 = arith.constant 0 : index
    %5 = vector.load %arg1[%c0_4, %c0_5] : memref<8x256xf32, #tpu.memory_space<vmem>>, vector<1x256xf32>
    %6 = vector.broadcast %4 : vector<8x1xf32> to vector<8x256xf32>
    %7 = vector.broadcast %5 : vector<1x256xf32> to vector<8x256xf32>
    %8 = arith.mulf %6, %7 : vector<8x256xf32>
    %9 = vector.broadcast %1 : vector<1x256xf32> to vector<8x256xf32>
    %10 = arith.addf %9, %8 : vector<8x256xf32>
    %11 = vector.extract_strided_slice %0 {offsets = [0, 1], sizes = [8, 1], strides = [1, 1]} : vector<8x2xf32> to vector<8x1xf32>
    %c1 = arith.constant 1 : index
    %c0_6 = arith.constant 0 : index
    %12 = vector.load %arg1[%c1, %c0_6] : memref<8x256xf32, #tpu.memory_space<vmem>>, vector<1x256xf32>
    %13 = vector.broadcast %11 : vector<8x1xf32> to vector<8x256xf32>
    %14 = vector.broadcast %12 : vector<1x256xf32> to vector<8x256xf32>
    %15 = arith.mulf %13, %14 : vector<8x256xf32>
    %16 = arith.addf %10, %15 : vector<8x256xf32>
    %cst = arith.constant 0.000000e+00 : f32
    %17 = vector.broadcast %cst : f32 to vector<8x256xf32>
    %18 = arith.maximumf %16, %17 : vector<8x256xf32>
    %19 = arith.truncf %18 : vector<8x256xf32> to vector<8x256xbf16>
    %c0_7 = arith.constant 0 : index
    %c0_8 = arith.constant 0 : index
    %20 = vector.load %arg2[%c0_7, %c0_8] : memref<256x384xbf16, #tpu.memory_space<vmem>>, vector<256x256xbf16>
    %cst_9 = arith.constant dense<0.000000e+00> : vector<8x256xf32>
    %21 = tpu.matmul %19, %20, %cst_9 {dimension_numbers = #tpu.dot_dimension_numbers<[1], [0], [0], [1], [0, 0, 1, 1], [], []>} : vector<8x256xbf16>, vector<256x256xbf16>, vector<8x256xf32> -> vector<8x256xf32>
    %22 = vector.broadcast %2 : vector<1x256xf32> to vector<8x256xf32>
    %23 = arith.addf %21, %22 : vector<8x256xf32>
    %cst_10 = arith.constant 0.000000e+00 : f32
    %24 = vector.broadcast %cst_10 : f32 to vector<8x256xf32>
    %25 = arith.maximumf %23, %24 : vector<8x256xf32>
    %26 = arith.truncf %25 : vector<8x256xf32> to vector<8x256xbf16>
    %c0_11 = arith.constant 0 : index
    %c256 = arith.constant 256 : index
    %27 = vector.load %arg2[%c0_11, %c256] : memref<256x384xbf16, #tpu.memory_space<vmem>>, vector<256x128xbf16>
    %cst_12 = arith.constant dense<0.000000e+00> : vector<8x128xf32>
    %28 = tpu.matmul %26, %27, %cst_12 {dimension_numbers = #tpu.dot_dimension_numbers<[1], [0], [0], [1], [0, 0, 1, 1], [], []>} : vector<8x256xbf16>, vector<256x128xbf16>, vector<8x128xf32> -> vector<8x128xf32>
    %29 = vector.broadcast %3 : vector<1x128xf32> to vector<8x128xf32>
    %30 = arith.addf %28, %29 : vector<8x128xf32>
    %cst_13 = arith.constant dense<0xFF800000> : vector<8xf32>
    %31 = vector.multi_reduction <maximumf>, %30, %cst_13 [1] : vector<8x128xf32> to vector<8xf32>
    %32 = vector.shape_cast %31 : vector<8xf32> to vector<8x1xf32>
    %33 = vector.broadcast %32 : vector<8x1xf32> to vector<8x128xf32>
    %34 = arith.subf %30, %33 : vector<8x128xf32>
    %35 = math.exp %34 : vector<8x128xf32>
    %cst_14 = arith.constant dense<0.000000e+00> : vector<8xf32>
    %36 = vector.multi_reduction <add>, %35, %cst_14 [1] : vector<8x128xf32> to vector<8xf32>
    %37 = vector.shape_cast %36 : vector<8xf32> to vector<8x1xf32>
    %38 = math.log %37 : vector<8x1xf32>
    %39 = vector.broadcast %38 : vector<8x1xf32> to vector<8x128xf32>
    %40 = arith.subf %34, %39 : vector<8x128xf32>
    %c0_15 = arith.constant 0 : index
    %c0_16 = arith.constant 0 : index
    %41 = vector.load %arg3[%c0_15, %c0_16] : memref<8x128xf32, #tpu.memory_space<vmem>>, vector<8x128xf32>
    %42 = arith.addf %30, %41 : vector<8x128xf32>
    %43 = tpu.iota {dimensions = array<i32: 1>} : vector<8x128xi32>
    %cst_17 = arith.constant dense<0xFF800000> : vector<8xf32>
    %44 = vector.multi_reduction <maximumf>, %42, %cst_17 [1] : vector<8x128xf32> to vector<8xf32>
    %45 = vector.shape_cast %44 : vector<8xf32> to vector<8x1xf32>
    %46 = vector.broadcast %45 : vector<8x1xf32> to vector<8x128xf32>
    %47 = arith.cmpf oge, %42, %46 : vector<8x128xf32>
    %c128_i32 = arith.constant 128 : i32
    %48 = vector.broadcast %c128_i32 : i32 to vector<8x128xi32>
    %49 = arith.select %47, %43, %48 : vector<8x128xi1>, vector<8x128xi32>
    %cst_18 = arith.constant dense<2147483647> : vector<8xi32>
    %50 = vector.multi_reduction <minsi>, %49, %cst_18 [1] : vector<8x128xi32> to vector<8xi32>
    %51 = vector.shape_cast %50 : vector<8xi32> to vector<8x1xi32>
    %52 = vector.broadcast %51 : vector<8x1xi32> to vector<8x128xi32>
    %53 = arith.cmpi eq, %43, %52 : vector<8x128xi32>
    %cst_19 = arith.constant 0.000000e+00 : f32
    %54 = vector.broadcast %cst_19 : f32 to vector<8x128xf32>
    %55 = arith.select %53, %40, %54 : vector<8x128xi1>, vector<8x128xf32>
    %cst_20 = arith.constant dense<0.000000e+00> : vector<8xf32>
    %56 = vector.multi_reduction <add>, %55, %cst_20 [1] : vector<8x128xf32> to vector<8xf32>
    %57 = vector.shape_cast %56 : vector<8xf32> to vector<8x1xf32>
    %c0_i32 = arith.constant 0 : i32
    %58 = vector.broadcast %c0_i32 : i32 to vector<8x128xi32>
    %59 = arith.cmpi eq, %43, %58 : vector<8x128xi32>
    %60 = arith.sitofp %51 : vector<8x1xi32> to vector<8x1xf32>
    %c1_i32 = arith.constant 1 : i32
    %61 = vector.broadcast %c1_i32 : i32 to vector<8x128xi32>
    %62 = arith.cmpi eq, %43, %61 : vector<8x128xi32>
    %cst_21 = arith.constant 0.000000e+00 : f32
    %63 = vector.shape_cast %57 : vector<8x1xf32> to vector<8x1xf32>
    %64 = vector.broadcast %63 : vector<8x1xf32> to vector<8x128xf32>
    %65 = vector.broadcast %cst_21 : f32 to vector<8x128xf32>
    %66 = arith.select %62, %64, %65 : vector<8x128xi1>, vector<8x128xf32>
    %67 = vector.shape_cast %60 : vector<8x1xf32> to vector<8x1xf32>
    %68 = vector.broadcast %67 : vector<8x1xf32> to vector<8x128xf32>
    %69 = arith.select %59, %68, %66 : vector<8x128xi1>, vector<8x128xf32>
    %c0_22 = arith.constant 0 : index
    %c0_23 = arith.constant 0 : index
    %70 = vector.load %arg4[%c0_22, %c0_23] : memref<8x128xf32, #tpu.memory_space<vmem>>, vector<8x128xf32>
    tpu.vector_store %arg4[%c0_22, %c0_23], %69 {strides = array<i32>} : memref<8x128xf32, #tpu.memory_space<vmem>>, vector<8x128xf32>,
    return
  }
}

</mosaic_0001>

<bundles_post_ra>
// kernel: policy_forward.1
= control target key start
LH: loop header
LB: loop body
LE: loop exit
PB: predicated region body
PF: predicated region fallthrough
CT: control target
= control target key end

     0   :  { %9 = vsyncpa [#allocation3], 0  ;;  %s728_s15 = smov [#allocation2]   ;;  %s785_s0 = inlined_call_operand.vmem [shape: f32[8,2], index: 0, kind: input, shape index: {}]   ;;  %s786_s1 = inlined_call_operand.vmem [shape: f32[8,256], index: 1, kind: input, shape index: {}]   ;;  %s787_s2 = inlined_call_operand.hbm [shape: bf16[256,384], index: 2, kind: input, shape index: {}]   ;;  %s788_s3 = inlined_call_operand.vmem [shape: f32[8,128], index: 3, kind: input, shape index: {}]   ;;  %s789_s4 = inlined_call_operand.vmem [shape: f32[8,128], index: 4, kind: output, shape index: {}]  }
   0x1   :  { %s19_s16 = sshll.u32 %s728_s15, 4  ;;  %s20_s16 = int_to_ptr.vmem [resolvable:$true] %s19_s16 }
   0x2   :  { %s714_s17 = scalar_lea.vmem %s20_s16, 6144  ;;  %p719_p1 = scmp.lt.s32.totalorder %s20_s16, %s20_s16 }
   0x3   :  { %p715_p0 = scmp.ne.s32.totalorder %s20_s16, %s714_s17  ;;  %p720_p2 = scmp.lt.s32.totalorder %s714_s17, %s714_s17 }
   0x5   :  { %p721_p3 = por %p720_p2, %p719_p1 }
   0x7   :  { %p722_p4 = pnand %p721_p3, %p715_p0 }
   0x9   :  { %725 = shalt.err (!%p722_p4)
}
   0xa   :  { %s729_s18 = smov 192   ;;  %s730_s19 = smov 12  }
   0xb   :  { %25 = dma.hbm_to_vmem [thread:$0]  %s787_s2, 6144, %s20_s16, [#allocation3], %s729_s18, %s729_s18, %s730_s19  }
   0xc   :  { %726 = dma.done.wait [#allocation3], 6144  }
   0xd   :  { %727 = vsyncadd [#allocation3], 4294961152  ;;  %v731_v0 = vmov 0   ;;  %v32_v1 = vld [vmem:[%s785_s0] sm:$0xff]  ;;  %v638_v2 = vld [vmem:[#allocation2 + $0xac] ss:$12 sps:$4 sm:$0xff]   ;;  %v45_v47 = vlaneseq }
   0xe   :  { %636 = vset.pattern.permute.xlu0 %v731_v0  ;;  %v640_v3 = vld [vmem:[#allocation2 + $0xa8] ss:$12 sps:$4 sm:$0xff]   ;;  %298 = vmatprep.subr.bf16.mxu0 %v638_v2  ;;  %v643_v5 = vld [vmem:[#allocation2 + $0x90] ss:$12 sps:$4 sm:$0xff]   ;;  %v732_v6 = vmov 1  }
   0xf   :  { %41 = vperm.xlu0 %636, %v32_v1   ;;  %v641_v4 = vld [vmem:[#allocation2 + $0x94] ss:$12 sps:$4 sm:$0xff]   ;;  %299 = vmatpush1.bf16.msra.mxu0 %v640_v3  ;;  %v644_v7 = vld [vmem:[#allocation2 + $0x7c] ss:$12 sps:$4 sm:$0xff]   ;;  %v646_v8 = vld [vmem:[#allocation2 + $0x78] ss:$12 sps:$4 sm:$0xff]  }
  0x10   :  { %300 = vmatprep.subr.bf16.mxu0 %v641_v4  ;;  %v647_v9 = vld [vmem:[#allocation2 + $0x64] ss:$12 sps:$4 sm:$0xff]   ;;  %v649_v10 = vld [vmem:[#allocation2 + $0x60] ss:$12 sps:$4 sm:$0xff]   ;;  %v652_v12 = vld [vmem:[#allocation2 + $0x48] ss:$12 sps:$4 sm:$0xff]  }
  0x11   :  { %v650_v11 = vld [vmem:[#allocation2 + $0x4c] ss:$12 sps:$4 sm:$0xff]   ;;  %v653_v13 = vld [vmem:[#allocation2 + $0x34] ss:$12 sps:$4 sm:$0xff]   ;;  %v655_v14 = vld [vmem:[#allocation2 + $0x30] ss:$12 sps:$4 sm:$0xff]  }
  0x12   :  { %v656_v15 = vld [vmem:[#allocation2 + $0x1c] ss:$12 sps:$4 sm:$0xff]   ;;  %v658_v16 = vld [vmem:[#allocation2 + $0x18] ss:$12 sps:$4 sm:$0xff]   ;;  %v690_v22 = vld [vmem:[#allocation2 + $0x140] ss:$12 sps:$4 sm:$0xff]  }
  0x13   :  { %637 = vset.pattern.permute.xlu0 %v732_v6  ;;  %301 = vmatpush1.bf16.msra.mxu0 %v643_v5  ;;  %v659_v17 = vld [vmem:[#allocation2 + $0x4] ss:$12 sps:$4 sm:$0xff]   ;;  %v661_v23 = vld [vmem:[#allocation2] ss:$12 sps:$4 sm:$0xff]   ;;  %v692_v26 = vld [vmem:[#allocation2 + $0x128] ss:$12 sps:$4 sm:$0xff]  }
  0x14   :  { %73 = vperm.xlu0 %637, %v32_v1   ;;  %302 = vmatprep.subr.bf16.mxu0 %v644_v7  ;;  %v686_v18 = vld [vmem:[#allocation2 + $0x170] ss:$12 sps:$4 sm:$0xff]   ;;  %v688_v20 = vld [vmem:[#allocation2 + $0x158] ss:$12 sps:$4 sm:$0xff]   ;;  %v691_v25 = vld [vmem:[#allocation2 + $0x80] ss:$12 sps:$4 sm:$0xff]  }
  0x15   :  { %v687_v19 = vld [vmem:[#allocation2 + $0xb0] ss:$12 sps:$4 sm:$0xff]   ;;  %609 = vmatprep.subr.bf16.mxu1 %v686_v18  ;;  %v689_v21 = vld [vmem:[#allocation2 + $0x98] ss:$12 sps:$4 sm:$0xff]   ;;  %v664_v27 = vld [vmem:[#allocation2 + $0x168] ss:$12 sps:$4 sm:$0xff]  }
  0x16   :  { %610 = vmatpush3.bf16.msra.mxu1 %v687_v19  ;;  %v662_v24 = vld [vmem:[#allocation2 + $0x16c] ss:$12 sps:$4 sm:$0xff]   ;;  %v665_v28 = vld [vmem:[#allocation2 + $0x154] ss:$12 sps:$4 sm:$0xff]   ;;  %v667_v29 = vld [vmem:[#allocation2 + $0x150] ss:$12 sps:$4 sm:$0xff]  }
  0x17   :  { %303 = vmatpush1.bf16.msra.mxu0 %v646_v8  ;;  %611 = vmatprep.subr.bf16.mxu1 %v688_v20  ;;  %v693_v30 = vld [vmem:[#allocation2 + $0x68] ss:$12 sps:$4 sm:$0xff]   ;;  %v694_v32 = vld [vmem:[#allocation2 + $0x110] ss:$12 sps:$4 sm:$0xff]   ;;  %v696_v34 = vld [vmem:[#allocation2 + $0xf8] ss:$12 sps:$4 sm:$0xff]  }
  0x18   :  { %304 = vmatprep.subr.bf16.mxu0 %v647_v9  ;;  %v668_v31 = vld [vmem:[#allocation2 + $0x13c] ss:$12 sps:$4 sm:$0xff]   ;;  %v670_v35 = vld [vmem:[#allocation2 + $0x138] ss:$12 sps:$4 sm:$0xff]   ;;  %v673_v38 = vld [vmem:[#allocation2 + $0x120] ss:$12 sps:$4 sm:$0xff]  }
  0x19   :  { %v695_v33 = vld [vmem:[#allocation2 + $0x50] ss:$12 sps:$4 sm:$0xff]   ;;  %v697_v37 = vld [vmem:[#allocation2 + $0x38] ss:$12 sps:$4 sm:$0xff]   ;;  %v676_v40 = vld [vmem:[#allocation2 + $0x108] ss:$12 sps:$4 sm:$0xff]  }
  0x1a   :  { %612 = vmatpush3.bf16.msra.mxu1 %v689_v21  ;;  %v671_v36 = vld [vmem:[#allocation2 + $0x124] ss:$12 sps:$4 sm:$0xff]   ;;  %v674_v39 = vld [vmem:[#allocation2 + $0x10c] ss:$12 sps:$4 sm:$0xff]   ;;  %v677_v41 = vld [vmem:[#allocation2 + $0xf4] ss:$12 sps:$4 sm:$0xff]  }
  0x1b   :  { %305 = vmatpush1.bf16.msra.mxu0 %v649_v10  ;;  %613 = vmatprep.subr.bf16.mxu1 %v690_v22  ;;  %v679_v42 = vld [vmem:[#allocation2 + $0xf0] ss:$12 sps:$4 sm:$0xff]   ;;  %v682_v44 = vld [vmem:[#allocation2 + $0xd8] ss:$12 sps:$4 sm:$0xff]   ;;  %v685_v46 = vld [vmem:[#allocation2 + $0xc0] ss:$12 sps:$4 sm:$0xff]  }
  0x1c   :  { %306 = vmatprep.subr.bf16.mxu0 %v650_v11  ;;  %v680_v43 = vld [vmem:[#allocation2 + $0xdc] ss:$12 sps:$4 sm:$0xff]   ;;  %v683_v45 = vld [vmem:[#allocation2 + $0xc4] ss:$12 sps:$4 sm:$0xff]   ;;  %v46_v48 = vshrl.u32 %v45_v47, 7 }
  0x1d   :  { %v38_v51 = vld [vmem:[%s786_s1] ss:$8 sm:$0x3]  ;;  %v558_v52 = vld [vmem:[%s786_s1 + $0x2] ss:$8 sm:$0x3] }
  0x1e   :  { %614 = vmatpush3.bf16.msra.mxu1 %v691_v25  ;;  %v47_v49 = vsub.s32 0, %v46_v48  ;;  %v51_v50 = vsub.s32 1, %v46_v48  ;;  %v560_v55 = vld [vmem:[%s786_s1 + $0x1] ss:$8 sm:$0x3] }
  0x1f   :  { %307 = vmatpush1.bf16.msra.mxu0 %v652_v12  ;;  %615 = vmatprep.subr.bf16.mxu1 %v692_v26  ;;  %v698_v10 = vld [vmem:[#allocation2 + $0xe0] ss:$12 sps:$4 sm:$0xff]   ;;  %v700_v12 = vld [vmem:[#allocation2 + $0xc8] ss:$12 sps:$4 sm:$0xff]  }
  0x20   :  { %308 = vmatprep.subr.bf16.mxu0 %v653_v13  ;;  %v48_v53 = vrot.slane %v38_v51, %v47_v49  ;;  %v52_v54 = vrot.slane %v38_v51, %v51_v50  ;;  %v61_v57 = vrot.slane %v558_v52, %v47_v49  ;;  %v65_v58 = vrot.slane %v558_v52, %v51_v50  ;;  %v699_v11 = vld [vmem:[#allocation2 + $0x20] ss:$12 sps:$4 sm:$0xff]   ;;  %v701_v13 = vld [vmem:[#allocation2 + $0x8] ss:$12 sps:$4 sm:$0xff]  }
  0x21   :  { %v80_v61 = vrot.slane %v560_v55, %v47_v49  ;;  %v84_v62 = vrot.slane %v560_v55, %v51_v50 }
  0x22   :  { %616 = vmatpush3.bf16.msra.mxu1 %v693_v30 }
  0x23   :  { %309 = vmatpush1.bf16.msra.mxu0 %v655_v14  ;;  %617 = vmatprep.subr.bf16.mxu1 %v694_v32  ;;  %v559_v14 = vld [vmem:[%s786_s1 + $0x3] ss:$8 sm:$0x3] }
  0x24   :  { %310 = vmatprep.subr.bf16.mxu0 %v656_v15  ;;  %v131_v15 = vrot.slane %v559_v14, %v47_v49  ;;  %v521_v32 = vld [vmem:[%s788_s3] sm:$0xff] }
  0x26   :  { %618 = vmatpush3.bf16.msra.mxu1 %v695_v33 }
  0x27   :  { %311 = vmatpush1.bf16.msra.mxu0 %v658_v16  ;;  %619 = vmatprep.subr.bf16.mxu1 %v696_v34  ;;  %v135_v16 = vrot.slane %v559_v14, %v51_v50 }
  0x28   :  { %312 = vmatprep.subr.bf16.mxu0 %v659_v17 }
  0x2a   :  { %620 = vmatpush3.bf16.msra.mxu1 %v697_v37 }
  0x2b   :  { %313 = vmatpush1.bf16.msra.mxu0 %v661_v23  ;;  %621 = vmatprep.subr.bf16.mxu1 %v698_v10 }
  0x2c   :  { %314 = vmatprep.subr.bf16.mxu0 %v662_v24 }
  0x2e   :  { %622 = vmatpush3.bf16.msra.mxu1 %v699_v11 }
  0x2f   :  { %315 = vmatpush2.bf16.msra.mxu0 %v664_v27  ;;  %623 = vmatprep.subr.bf16.mxu1 %v700_v12 }
  0x30   :  { %316 = vmatprep.subr.bf16.mxu0 %v665_v28  ;;  %v37_v28 = vld [vmem:[%s786_s1 + $0x4] ss:$0 sm:$0xff] }
  0x32   :  { %624 = vmatpush3.bf16.msra.mxu1 %v701_v13 }
  0x33   :  { %317 = vmatpush2.bf16.msra.mxu0 %v667_v29 }
  0x34   :  { %318 = vmatprep.subr.bf16.mxu0 %v668_v31 }
  0x37   :  { %319 = vmatpush2.bf16.msra.mxu0 %v670_v35 }
  0x38   :  { %320 = vmatprep.subr.bf16.mxu0 %v671_v36  ;;  %v524_v36 = vand.u32 127, %v45_v47 }
  0x3a   :  { %vm549_vm3 = vcmp.eq.s32.totalorder %v524_v36, 1  ;;  %vm547_vm4 = vcmp.eq.s32.totalorder %v524_v36, 0 }
  0x3b   :  { %321 = vmatpush2.bf16.msra.mxu0 %v673_v38 }
  0x3c   :  { %322 = vmatprep.subr.bf16.mxu0 %v674_v39 }
  0x3f   :  { %323 = vmatpush2.bf16.msra.mxu0 %v676_v40 }
  0x40   :  { %324 = vmatprep.subr.bf16.mxu0 %v677_v41 }
  0x43   :  { %325 = vmatpush2.bf16.msra.mxu0 %v679_v42 }
  0x44   :  { %326 = vmatprep.subr.bf16.mxu0 %v680_v43 }
  0x47   :  { %327 = vmatpush2.bf16.msra.mxu0 %v682_v44 }
  0x48   :  { %328 = vmatprep.subr.bf16.mxu0 %v683_v45 }
  0x4b   :  { %329 = vmatpush2.bf16.msra.mxu0 %v685_v46 }
  0x8a   :  { %v42_v56 = vpop.permute.xlu0 %41 }
  0x8b   :  { %v55_v59 = vmul.f32 %v48_v53, %v42_v56  ;;  %v56_v60 = vmul.f32 %v52_v54, %v42_v56 }
  0x8d   :  { %v68_v0 = vadd.f32 %v61_v57, %v55_v59  ;;  %v69_v3 = vadd.f32 %v65_v58, %v56_v60 }
  0x8f   :  { %v74_v63 = vpop.permute.xlu0 %73 }
  0x90   :  { %v87_v1 = vmul.f32 %v80_v61, %v74_v63  ;;  %v88_v2 = vmul.f32 %v84_v62, %v74_v63 }
  0x92   :  { %v89_v4 = vadd.f32 %v87_v1, %v68_v0  ;;  %v90_v5 = vadd.f32 %v88_v2, %v69_v3 }
  0x94   :  { %v91_v6 = vmax.f32 %v89_v4, 0.0  ;;  %v92_v7 = vmax.f32 %v90_v5, 0.0 }
  0x96   :  { %v94_v8 = vpack.c.bf16 %v92_v7, %v92_v7  ;;  %v93_v9 = vpack.c.bf16 %v91_v6, %v91_v6 }
  0x98   :  { %330 = vmatprep.mubr.bf16.mxu0 %v94_v8 }
  0x99   :  { %331 = vmatmul.mubr.bf16.vlgmr.msra.gmra.mxu0 %v93_v9 }
 0x159   :  { %v332_v17 = vpop.f32.mrf.mxu0 }
 0x15a   :  { %v333_v18 = vadd.f32 %v332_v17, %v131_v15 }
 0x15b   :  { %v334_v19 = vpop.f32.mrf.mxu0 }
 0x15c   :  { %v335_v20 = vadd.f32 %v334_v19, %v135_v16  ;;  %v339_v21 = vmax.f32 %v333_v18, 0.0 }
 0x15d   :  { %v336_v22 = vpop.f32.mrf.mxu0 }
 0x15e   :  { %v340_v23 = vmax.f32 %v335_v20, 0.0  ;;  %v341_v26 = vpack.c.bf16 %v339_v21, %v339_v21 }
 0x15f   :  { %v337_v24 = vpop.f32.mrf.mxu0 }
 0x160   :  { %v342_v25 = vpack.c.bf16 %v340_v23, %v340_v23 }
 0x162   :  { %503 = vmatprep.mubr.bf16.mxu1 %v342_v25 }
 0x163   :  { %504 = vmatmul.mubr.bf16.vlgmr.msra.gmra.mxu1 %v341_v26 }
 0x223   :  { %v625_v27 = vpop.f32.mrf.mxu1 }
 0x225   :  { %v626_v29 = vpop.f32.mrf.mxu1 }
 0x226   :  { %v627_v30 = vadd.f32 %v626_v29, %v625_v27 }
 0x227   :  { %v628_v31 = vpop.f32.mrf.mxu1 }
 0x228   :  { %v506_v33 = vadd.f32 %v627_v30, %v37_v28 }
 0x229   :  { %v629_v34 = vpop.f32.mrf.mxu1 }
 0x22a   :  { %v522_v35 = vadd.f32 %v521_v32, %v506_v33 }
 0x22c   :  { %525 = vmax.xlane.f32.xlu1 %v522_v35 }
 0x230   :  { %511 = vmax.xlane.f32.xlu1 %v506_v33 }
 0x2b5   :  { %v526_v37 = vpop.xlane.xlu1 %525 }
 0x2b6   :  { %vm527_vm0 = vcmp.ge.f32.partialorder %v522_v35, %v526_v37 }
 0x2b7   :  { %v528_v38 = vsel %vm527_vm0, %v524_v36, 128 }
 0x2b8   :  { %v530_v39 = vshra.s32 %v528_v38, 16  ;;  %v529_v45 = vand.u32 65535, %v528_v38 }
 0x2b9   :  { %v512_v40 = vpop.xlane.xlu1 %511 }
 0x2ba   :  { %v513_v41 = vsub.f32 %v506_v33, %v512_v40  ;;  %v532_v42 = vcvt.s32.f32 %v530_v39  ;;  %v531_v48 = vcvt.s32.f32 %v529_v45 }
 0x2bc   :  { %v514_v43 = vmul.f32 1.442695, %v513_v41  ;;  %533 = vmin.xlane.f32.xlu1 %v532_v42 }
 0x2be   :  { %702 = vpow2.f32 %v514_v43 }
 0x2cb   :  { %v703_v44 = vpop.eup %702 }
 0x2cc   :  { %516 = vadd.xlane.f32.xlu0 %v703_v44 }
 0x345   :  { %v534_v46 = vpop.xlane.xlu1 %533 }
 0x346   :  { %vm535_vm1 = vcmp.eq.f32.partialorder %v532_v42, %v534_v46  ;;  %v540_v51 = vcvt.f32.s32 %v534_v46 }
 0x347   :  { %v536_v49 = vsel %vm535_vm1, %v531_v48, inf }
 0x348   :  { %537 = vmin.xlane.f32.xlu1 %v536_v49  ;;  %v541_v54 = vshll.u32 %v540_v51, 16 }
 0x355   :  { %v517_v50 = vpop.xlane.xlu0 %516 }
 0x356   :  { %704 = vlog2.f32 %v517_v50 }
 0x363   :  { %v705_v47 = vpop.eup %704 }
 0x364   :  { %v519_v52 = vmul.f32 0.6931472, %v705_v47 }
 0x366   :  { %v520_v57 = vsub.f32 %v513_v41, %v519_v52 }
 0x3d1   :  { %v538_v53 = vpop.xlane.xlu1 %537 }
 0x3d2   :  { %v539_v55 = vcvt.f32.s32 %v538_v53 }
 0x3d4   :  { %v542_v56 = vadd.s32 %v541_v54, %v539_v55 }
 0x3d6   :  { %vm543_vm2 = vcmp.eq.s32.totalorder %v524_v36, %v542_v56  ;;  %v548_v59 = vcvt.s32.f32 %v542_v56 }
 0x3d7   :  { %v544_v58 = vsel %vm543_vm2, %v520_v57, 0.0 }
 0x3d8   :  { %545 = vadd.xlane.f32.xlu1 %v544_v58 }
 0x461   :  { %v546_v60 = vpop.xlane.xlu1 %545 }
 0x462   :  { %v550_v61 = vsel %vm549_vm3, %v546_v60, 0.0 }
 0x463   :  { %v551_v62 = vsel %vm547_vm4, %v548_v59, %v550_v61 }
 0x464   :  { %552 = vst [vmem:[%s789_s4] sm:$0xff] %v551_v62 }
 0x465   :  { %557 = vsyncpa [#allocation3], 1 }

</bundles_post_ra>
